<compile_context>
chip_gen: v5e
topology: v5e:2x2
jax: 0.10.0
libtpu: 0.0.40
codegen_flags: <defaults>
</compile_context>

<pallas_src>
import functools

import jax
import jax.numpy as jnp
from jax.experimental import pallas as pl
from jax.experimental.pallas import tpu as pltpu

_SQRT_2_OVER_PI = 0.7978845608028654
_INV_SQRT2 = 0.7071067811865476
_BN_EPS = 1e-5


def _gelu(x):
    # tanh-approximate GELU (EUP-friendly).
    # TODO(synk): PyTorch nn.GELU defaults to the exact erf form (~1e-3 apart).
    return 0.5 * x * (1.0 + jnp.tanh(_SQRT_2_OVER_PI * (x + 0.044715 * x * x * x)))


# ---------------------------------------------------------------------------
# Fused kernel: all GINE layers in one invocation.
# ---------------------------------------------------------------------------
def _fused_gine_kernel(eps_ref, x_ref, gsrc_ref, sdstw_ref, eattr_ref,
                       wenc_ref, benc_ref, w1_ref, b1_ref, w2_ref, b2_ref,
                       o_ref, *, num_layers, apply_residual):
    f32 = jnp.float32
    bf16 = jnp.bfloat16

    # Shared bond encoder, computed ONCE for all layers (layer-invariant).
    eemb = jnp.dot(eattr_ref[...], wenc_ref[...],
                   preferred_element_type=f32) + benc_ref[...]

    x = x_ref[...]                                   # (N, H) f32, VMEM-resident

    for l in range(num_layers):                      # small static loop, unrolled
        # gather x_j = x[src] as one-hot matmul: (E,N)bf16 @ (N,H)bf16 -> f32
        x_src = jnp.dot(gsrc_ref[...], x.astype(bf16), preferred_element_type=f32)
        # message(x_j, e_ij, w_ij) = GELU(x_j + e_ij) * w_ij ; the * w_ij is
        # folded into the scatter operator below.
        msg = _gelu(x_src + eemb)
        # aggr='add' scatter: (N,E)bf16 (pre-scaled by edge_weight) @ (E,H)bf16
        aggr = jnp.dot(sdstw_ref[...], msg.astype(bf16), preferred_element_type=f32)
        # (1 + eps) * x_i + aggregated messages
        h = (1.0 + eps_ref[l]) * x + aggr
        # GINE mlp: Linear -> GELU -> Linear  (inference BN folded into W2/b2)
        h1 = _gelu(jnp.dot(h.astype(bf16), w1_ref[l],
                           preferred_element_type=f32) + b1_ref[l])
        h2 = jnp.dot(h1.astype(bf16), w2_ref[l],
                     preferred_element_type=f32) + b2_ref[l]
        h2 = _gelu(h2)
        # TODO(synk): training-mode dropout / batch-statistics BatchNorm not
        # implemented; forward here is eval mode (dropout == identity).
        if apply_residual:
            x = (x + h2) * _INV_SQRT2                # residual(): (old+new)/sqrt(2)
        else:
            x = h2

    o_ref[...] = x.astype(o_ref.dtype)


# ---------------------------------------------------------------------------
# Wrapper: builds kernel-ready operands (folding done here, once).
# ---------------------------------------------------------------------------
def _prepare_operands(x, edge_index, edge_attr, edge_weight, params, *, use_bn):
    bf16 = jnp.bfloat16
    f32 = jnp.float32
    n = x.shape[0]
    e = edge_index.shape[1]
    src, dst = edge_index[0], edge_index[1]

    if edge_weight is None:
        ew = jnp.ones((e,), f32)                      # x.new_ones(E, 1)
    else:
        ew = edge_weight.reshape(e).astype(f32)       # edge_weight[:, None]

    # One-hot gather operator (E,N) and edge-weight-folded scatter operator
    # (N,E), built once and reused by every layer inside the kernel.
    gsrc = jax.nn.one_hot(src, n, dtype=bf16)
    sdstw = (jax.nn.one_hot(dst, n, axis=0, dtype=f32) * ew[None, :]).astype(bf16)

    enc = params["edge_encoder"]
    wenc = enc["w"].astype(bf16)
    benc = enc["b"].reshape(1, -1).astype(f32)

    layers = params["layers"]
    num_layers = len(layers)
    h = layers[0]["w1"].shape[0]
    for layer in layers:
        # TODO(synk): heterogeneous last-layer width would need a separate
        # (non-stacked) final layer; all-equal widths in this model config.
        assert layer["w1"].shape == (h, h) and layer["w2"].shape == (h, h)

    eps = jnp.stack([l["eps"].reshape(()) for l in layers]).astype(f32)   # (L,)
    w1 = jnp.stack([l["w1"] for l in layers]).astype(bf16)                # (L,H,H)
    b1 = jnp.stack([l["b1"].reshape(1, -1) for l in layers]).astype(f32)  # (L,1,H)

    # Fold inference BatchNorm into the second linear (exact algebra).
    w2s, b2s = [], []
    for l in layers:
        if use_bn:
            inv_std = 1.0 / jnp.sqrt(l["bn_var"] + _BN_EPS)
            scale = l["bn_gamma"] * inv_std
            shift = l["bn_beta"] - l["bn_mean"] * scale
        else:
            scale = jnp.ones_like(l["b2"])
            shift = jnp.zeros_like(l["b2"])
        w2s.append(l["w2"] * scale[None, :])
        b2s.append((l["b2"] * scale + shift).reshape(1, -1))
    w2 = jnp.stack(w2s).astype(bf16)                                      # (L,H,H)
    b2 = jnp.stack(b2s).astype(f32)                                       # (L,1,H)

    return dict(eps=eps, x=x.astype(f32), gsrc=gsrc, sdstw=sdstw,
                eattr=edge_attr.astype(bf16), wenc=wenc, benc=benc,
                w1=w1, b1=b1, w2=w2, b2=b2, num_layers=num_layers)


def base_gine_forward(x, edge_index, edge_attr, edge_weight, params, *,
                      use_bn=True, use_residual=True):
    """BaseGINE.forward (eval mode) — all layers in a single fused Pallas kernel."""
    ops = _prepare_operands(x, edge_index, edge_attr, edge_weight, params,
                            use_bn=use_bn)
    n, h = x.shape
    kernel = functools.partial(_fused_gine_kernel,
                               num_layers=ops["num_layers"],
                               apply_residual=bool(use_residual))

    def _vmem(shape):
        return pl.BlockSpec(shape, lambda _: (0,) * len(shape))

    in_specs = [
        pl.BlockSpec(memory_space=pltpu.MemorySpace.SMEM),  # eps (L,)
        _vmem(ops["x"].shape),       # x            (N, H)  f32
        _vmem(ops["gsrc"].shape),    # gather op    (E, N)  bf16
        _vmem(ops["sdstw"].shape),   # scatter op   (N, E)  bf16 (weight-folded)
        _vmem(ops["eattr"].shape),   # edge_attr    (E, DE) bf16
        _vmem(ops["wenc"].shape),    # encoder W    (DE, H) bf16
        _vmem(ops["benc"].shape),    # encoder b    (1, H)  f32
        _vmem(ops["w1"].shape),      # mlp W1       (L, H, H) bf16
        _vmem(ops["b1"].shape),      # mlp b1       (L, 1, H) f32
        _vmem(ops["w2"].shape),      # mlp W2 (BN-folded) (L, H, H) bf16
        _vmem(ops["b2"].shape),      # mlp b2 (BN-folded) (L, 1, H) f32
    ]

    return pl.pallas_call(
        kernel,
        out_shape=jax.ShapeDtypeStruct((n, h), x.dtype),
        grid=(1,),
        in_specs=in_specs,
        out_specs=_vmem((n, h)),
        compiler_params=pltpu.CompilerParams(dimension_semantics=("arbitrary",)),
    )(ops["eps"], ops["x"], ops["gsrc"], ops["sdstw"], ops["eattr"],
      ops["wenc"], ops["benc"], ops["w1"], ops["b1"], ops["w2"], ops["b2"])


# ---------------------------------------------------------------------------
# References for the correctness check.
# ---------------------------------------------------------------------------
def _ref_matched(x, edge_index, edge_attr, edge_weight, params, *,
                 use_bn=True, use_residual=True):
    """Pure-JAX mirror of the kernel numerics (same bf16 casts / foldings)."""
    ops = _prepare_operands(x, edge_index, edge_attr, edge_weight, params,
                            use_bn=use_bn)
    f32, bf16 = jnp.float32, jnp.bfloat16
    eemb = jnp.dot(ops["eattr"], ops["wenc"], preferred_element_type=f32) + ops["benc"]
    xx = ops["x"]
    for l in range(ops["num_layers"]):
        x_src = jnp.dot(ops["gsrc"], xx.astype(bf16), preferred_element_type=f32)
        msg = _gelu(x_src + eemb)
        aggr = jnp.dot(ops["sdstw"], msg.astype(bf16), preferred_element_type=f32)
        h = (1.0 + ops["eps"][l]) * xx + aggr
        h1 = _gelu(jnp.dot(h.astype(bf16), ops["w1"][l],
                           preferred_element_type=f32) + ops["b1"][l])
        h2 = jnp.dot(h1.astype(bf16), ops["w2"][l],
                     preferred_element_type=f32) + ops["b2"][l]
        h2 = _gelu(h2)
        xx = (xx + h2) * _INV_SQRT2 if use_residual else h2
    return xx


def _ref_gold(x, edge_index, edge_attr, edge_weight, params, *,
              use_bn=True, use_residual=True):
    """Full-f32 HIGHEST-precision reference (gather + scatter-add)."""
    hp = jax.lax.Precision.HIGHEST
    src, dst = edge_index[0], edge_index[1]
    e = edge_index.shape[1]
    ew = (jnp.ones((e, 1), x.dtype) if edge_weight is None
          else edge_weight.reshape(e, 1).astype(x.dtype))
    enc = params["edge_encoder"]
    eemb = jnp.dot(edge_attr, enc["w"], precision=hp) + enc["b"]
    for layer in params["layers"]:
        msg = _gelu(x[src] + eemb) * ew
        aggr = jnp.zeros_like(x).at[dst].add(msg)
        h = (1.0 + layer["eps"][0]) * x + aggr
        h1 = _gelu(jnp.dot(h, layer["w1"], precision=hp) + layer["b1"])
        h2 = jnp.dot(h1, layer["w2"], precision=hp) + layer["b2"]
        if use_bn:
            h2 = ((h2 - layer["bn_mean"]) / jnp.sqrt(layer["bn_var"] + _BN_EPS)
                  * layer["bn_gamma"] + layer["bn_beta"])
        h2 = _gelu(h2)
        x = (x + h2) * _INV_SQRT2 if (use_residual and h2.shape == x.shape) else h2
    return x


if __name__ == "__main__":
    key = jax.random.PRNGKey(0)
    N, E, H, DE = 32, 64, 128, 16      # nodes, edges, hidden=out_feature, edge dim
    NUM_LAYERS = 2

    ks = jax.random.split(key, 8 + 8 * NUM_LAYERS)
    x = jax.random.normal(ks[0], (N, H), jnp.float32)
    src = jax.random.randint(ks[1], (E,), 0, N)
    dst = jax.random.randint(ks[2], (E,), 0, N)
    edge_index = jnp.stack([src, dst]).astype(jnp.int32)
    edge_attr = jax.random.normal(ks[3], (E, DE), jnp.float32)
    edge_weight = jax.random.uniform(ks[4], (E,), jnp.float32)

    edge_encoder = {
        "w": jax.random.normal(ks[5], (DE, H), jnp.float32) / jnp.sqrt(float(DE)),
        "b": 0.1 * jax.random.normal(ks[6], (H,), jnp.float32),
    }
    layers = []
    for i in range(NUM_LAYERS):
        kk = ks[8 + 8 * i: 8 + 8 * (i + 1)]
        layers.append({
            "eps": jnp.array([0.1], jnp.float32),
            "w1": jax.random.normal(kk[0], (H, H), jnp.float32) / jnp.sqrt(float(H)),
            "b1": 0.1 * jax.random.normal(kk[1], (H,), jnp.float32),
            "w2": jax.random.normal(kk[2], (H, H), jnp.float32) / jnp.sqrt(float(H)),
            "b2": 0.1 * jax.random.normal(kk[3], (H,), jnp.float32),
            "bn_gamma": 1.0 + 0.1 * jax.random.normal(kk[4], (H,), jnp.float32),
            "bn_beta": 0.1 * jax.random.normal(kk[5], (H,), jnp.float32),
            "bn_mean": 0.05 * jax.random.normal(kk[6], (H,), jnp.float32),
            "bn_var": jax.random.uniform(kk[7], (H,), jnp.float32, 0.5, 1.5),
        })
    params = {"edge_encoder": edge_encoder, "layers": layers}

    out = jax.block_until_ready(
        base_gine_forward(x, edge_index, edge_attr, edge_weight, params,
                          use_bn=True, use_residual=True))

    ref_m = jax.block_until_ready(
        _ref_matched(x, edge_index, edge_attr, edge_weight, params,
                     use_bn=True, use_residual=True))
    ref_g = jax.block_until_ready(
        _ref_gold(x, edge_index, edge_attr, edge_weight, params,
                  use_bn=True, use_residual=True))

    assert out.shape == ref_g.shape and out.dtype == ref_g.dtype
    assert bool(jnp.all(jnp.isfinite(out)))
    # Logic check: reference mirroring the kernel's bf16-MXU/f32-accumulate math.
    assert bool(jnp.allclose(out, ref_m, atol=2e-3, rtol=2e-3))
    # Fidelity check vs full-f32 HIGHEST reference; gap is single-pass bf16 MXU
    # rounding (the intended precision/perf tradeoff from the review).
    assert bool(jnp.allclose(out, ref_g, atol=3e-2, rtol=3e-2))
    print("KERNEL_OK")
</pallas_src>

<mosaic_0001>
module attributes {stable_mosaic.version = 11 : i64} {
  func.func @_fused_gine_kernel(%arg0: i32, %arg1: memref<2xf32, #tpu.memory_space<smem>>, %arg2: memref<32x128xf32, #tpu.memory_space<vmem>>, %arg3: memref<64x32xbf16, #tpu.memory_space<vmem>>, %arg4: memref<32x64xbf16, #tpu.memory_space<vmem>>, %arg5: memref<64x16xbf16, #tpu.memory_space<vmem>>, %arg6: memref<16x128xbf16, #tpu.memory_space<vmem>>, %arg7: memref<1x128xf32, #tpu.memory_space<vmem>>, %arg8: memref<2x128x128xbf16, #tpu.memory_space<vmem>>, %arg9: memref<2x1x128xf32, #tpu.memory_space<vmem>>, %arg10: memref<2x128x128xbf16, #tpu.memory_space<vmem>>, %arg11: memref<2x1x128xf32, #tpu.memory_space<vmem>>, %arg12: memref<32x128xf32, #tpu.memory_space<vmem>>) attributes {dimension_semantics = [#tpu.dimension_semantics<arbitrary>], iteration_bounds = array<i64: 1>, scalar_prefetch = 0 : i64, scratch_operands = 0 : i64, tpu.core_type = #tpu.core_type<tc>, window_params = [{transform_indices = @transform_0, window_bounds = array<i64: 2>}, {pipeline_mode = #tpu.pipeline_mode<synchronous>, transform_indices = @transform_1, window_bounds = array<i64: 32, 128>}, {pipeline_mode = #tpu.pipeline_mode<synchronous>, transform_indices = @transform_2, window_bounds = array<i64: 64, 32>}, {pipeline_mode = #tpu.pipeline_mode<synchronous>, transform_indices = @transform_3, window_bounds = array<i64: 32, 64>}, {pipeline_mode = #tpu.pipeline_mode<synchronous>, transform_indices = @transform_4, window_bounds = array<i64: 64, 16>}, {pipeline_mode = #tpu.pipeline_mode<synchronous>, transform_indices = @transform_5, window_bounds = array<i64: 16, 128>}, {pipeline_mode = #tpu.pipeline_mode<synchronous>, transform_indices = @transform_6, window_bounds = array<i64: 1, 128>}, {pipeline_mode = #tpu.pipeline_mode<synchronous>, transform_indices = @transform_7, window_bounds = array<i64: 2, 128, 128>}, {pipeline_mode = #tpu.pipeline_mode<synchronous>, transform_indices = @transform_8, window_bounds = array<i64: 2, 1, 128>}, {pipeline_mode = #tpu.pipeline_mode<synchronous>, transform_indices = @transform_9, window_bounds = array<i64: 2, 128, 128>}, {pipeline_mode = #tpu.pipeline_mode<synchronous>, transform_indices = @transform_10, window_bounds = array<i64: 2, 1, 128>}, {pipeline_mode = #tpu.pipeline_mode<synchronous>, transform_indices = @transform_11, window_bounds = array<i64: 32, 128>}]} {
    %c0 = arith.constant 0 : index
    %c0_0 = arith.constant 0 : index
    %0 = vector.load %arg5[%c0, %c0_0] : memref<64x16xbf16, #tpu.memory_space<vmem>>, vector<64x16xbf16>
    %c0_1 = arith.constant 0 : index
    %c0_2 = arith.constant 0 : index
    %1 = vector.load %arg6[%c0_1, %c0_2] : memref<16x128xbf16, #tpu.memory_space<vmem>>, vector<16x128xbf16>
    %cst = arith.constant dense<0.000000e+00> : vector<64x128xf32>
    %2 = tpu.matmul %0, %1, %cst {dimension_numbers = #tpu.dot_dimension_numbers<[1], [0], [0], [1], [0, 0, 1, 1], [], []>} : vector<64x16xbf16>, vector<16x128xbf16>, vector<64x128xf32> -> vector<64x128xf32>
    %c0_3 = arith.constant 0 : index
    %c0_4 = arith.constant 0 : index
    %3 = vector.load %arg7[%c0_3, %c0_4] : memref<1x128xf32, #tpu.memory_space<vmem>>, vector<1x128xf32>
    %4 = vector.broadcast %3 : vector<1x128xf32> to vector<64x128xf32>
    %5 = arith.addf %2, %4 : vector<64x128xf32>
    %c0_5 = arith.constant 0 : index
    %c0_6 = arith.constant 0 : index
    %6 = vector.load %arg2[%c0_5, %c0_6] : memref<32x128xf32, #tpu.memory_space<vmem>>, vector<32x128xf32>
    %c0_7 = arith.constant 0 : index
    %c0_8 = arith.constant 0 : index
    %7 = vector.load %arg3[%c0_7, %c0_8] : memref<64x32xbf16, #tpu.memory_space<vmem>>, vector<64x32xbf16>
    %8 = arith.truncf %6 : vector<32x128xf32> to vector<32x128xbf16>
    %cst_9 = arith.constant dense<0.000000e+00> : vector<64x128xf32>
    %9 = tpu.matmul %7, %8, %cst_9 {dimension_numbers = #tpu.dot_dimension_numbers<[1], [0], [0], [1], [0, 0, 1, 1], [], []>} : vector<64x32xbf16>, vector<32x128xbf16>, vector<64x128xf32> -> vector<64x128xf32>
    %10 = arith.addf %9, %5 : vector<64x128xf32>
    %cst_10 = arith.constant 5.000000e-01 : f32
    %11 = vector.broadcast %cst_10 : f32 to vector<64x128xf32>
    %12 = arith.mulf %11, %10 : vector<64x128xf32>
    %cst_11 = arith.constant 4.471500e-02 : f32
    %13 = vector.broadcast %cst_11 : f32 to vector<64x128xf32>
    %14 = arith.mulf %13, %10 : vector<64x128xf32>
    %15 = arith.mulf %14, %10 : vector<64x128xf32>
    %16 = arith.mulf %15, %10 : vector<64x128xf32>
    %17 = arith.addf %10, %16 : vector<64x128xf32>
    %cst_12 = arith.constant 0.797884583 : f32
    %18 = vector.broadcast %cst_12 : f32 to vector<64x128xf32>
    %19 = arith.mulf %18, %17 : vector<64x128xf32>
    %20 = math.tanh %19 : vector<64x128xf32>
    %cst_13 = arith.constant 1.000000e+00 : f32
    %21 = vector.broadcast %cst_13 : f32 to vector<64x128xf32>
    %22 = arith.addf %21, %20 : vector<64x128xf32>
    %23 = arith.mulf %12, %22 : vector<64x128xf32>
    %c0_14 = arith.constant 0 : index
    %c0_15 = arith.constant 0 : index
    %24 = vector.load %arg4[%c0_14, %c0_15] : memref<32x64xbf16, #tpu.memory_space<vmem>>, vector<32x64xbf16>
    %25 = arith.truncf %23 : vector<64x128xf32> to vector<64x128xbf16>
    %cst_16 = arith.constant dense<0.000000e+00> : vector<32x128xf32>
    %26 = tpu.matmul %24, %25, %cst_16 {dimension_numbers = #tpu.dot_dimension_numbers<[1], [0], [0], [1], [0, 0, 1, 1], [], []>} : vector<32x64xbf16>, vector<64x128xbf16>, vector<32x128xf32> -> vector<32x128xf32>
    %c0_17 = arith.constant 0 : index
    %27 = memref.load %arg1[%c0_17] : memref<2xf32, #tpu.memory_space<smem>>
    %cst_18 = arith.constant 1.000000e+00 : f32
    %28 = arith.addf %cst_18, %27 : f32
    %29 = vector.broadcast %28 : f32 to vector<32x128xf32>
    %30 = arith.mulf %29, %6 : vector<32x128xf32>
    %31 = arith.addf %30, %26 : vector<32x128xf32>
    %32 = arith.truncf %31 : vector<32x128xf32> to vector<32x128xbf16>
    %c0_19 = arith.constant 0 : index
    %c0_20 = arith.constant 0 : index
    %c0_21 = arith.constant 0 : index
    %33 = vector.load %arg8[%c0_19, %c0_20, %c0_21] : memref<2x128x128xbf16, #tpu.memory_space<vmem>>, vector<1x128x128xbf16>
    %34 = vector.shape_cast %33 : vector<1x128x128xbf16> to vector<128x128xbf16>
    %cst_22 = arith.constant dense<0.000000e+00> : vector<32x128xf32>
    %35 = tpu.matmul %32, %34, %cst_22 {dimension_numbers = #tpu.dot_dimension_numbers<[1], [0], [0], [1], [0, 0, 1, 1], [], []>} : vector<32x128xbf16>, vector<128x128xbf16>, vector<32x128xf32> -> vector<32x128xf32>
    %c0_23 = arith.constant 0 : index
    %c0_24 = arith.constant 0 : index
    %c0_25 = arith.constant 0 : index
    %36 = vector.load %arg9[%c0_23, %c0_24, %c0_25] : memref<2x1x128xf32, #tpu.memory_space<vmem>>, vector<1x1x128xf32>
    %37 = vector.shape_cast %36 : vector<1x1x128xf32> to vector<1x128xf32>
    %38 = vector.broadcast %37 : vector<1x128xf32> to vector<32x128xf32>
    %39 = arith.addf %35, %38 : vector<32x128xf32>
    %cst_26 = arith.constant 5.000000e-01 : f32
    %40 = vector.broadcast %cst_26 : f32 to vector<32x128xf32>
    %41 = arith.mulf %40, %39 : vector<32x128xf32>
    %cst_27 = arith.constant 4.471500e-02 : f32
    %42 = vector.broadcast %cst_27 : f32 to vector<32x128xf32>
    %43 = arith.mulf %42, %39 : vector<32x128xf32>
    %44 = arith.mulf %43, %39 : vector<32x128xf32>
    %45 = arith.mulf %44, %39 : vector<32x128xf32>
    %46 = arith.addf %39, %45 : vector<32x128xf32>
    %cst_28 = arith.constant 0.797884583 : f32
    %47 = vector.broadcast %cst_28 : f32 to vector<32x128xf32>
    %48 = arith.mulf %47, %46 : vector<32x128xf32>
    %49 = math.tanh %48 : vector<32x128xf32>
    %cst_29 = arith.constant 1.000000e+00 : f32
    %50 = vector.broadcast %cst_29 : f32 to vector<32x128xf32>
    %51 = arith.addf %50, %49 : vector<32x128xf32>
    %52 = arith.mulf %41, %51 : vector<32x128xf32>
    %53 = arith.truncf %52 : vector<32x128xf32> to vector<32x128xbf16>
    %c0_30 = arith.constant 0 : index
    %c0_31 = arith.constant 0 : index
    %c0_32 = arith.constant 0 : index
    %54 = vector.load %arg10[%c0_30, %c0_31, %c0_32] : memref<2x128x128xbf16, #tpu.memory_space<vmem>>, vector<1x128x128xbf16>
    %55 = vector.shape_cast %54 : vector<1x128x128xbf16> to vector<128x128xbf16>
    %cst_33 = arith.constant dense<0.000000e+00> : vector<32x128xf32>
    %56 = tpu.matmul %53, %55, %cst_33 {dimension_numbers = #tpu.dot_dimension_numbers<[1], [0], [0], [1], [0, 0, 1, 1], [], []>} : vector<32x128xbf16>, vector<128x128xbf16>, vector<32x128xf32> -> vector<32x128xf32>
    %c0_34 = arith.constant 0 : index
    %c0_35 = arith.constant 0 : index
    %c0_36 = arith.constant 0 : index
    %57 = vector.load %arg11[%c0_34, %c0_35, %c0_36] : memref<2x1x128xf32, #tpu.memory_space<vmem>>, vector<1x1x128xf32>
    %58 = vector.shape_cast %57 : vector<1x1x128xf32> to vector<1x128xf32>
    %59 = vector.broadcast %58 : vector<1x128xf32> to vector<32x128xf32>
    %60 = arith.addf %56, %59 : vector<32x128xf32>
    %cst_37 = arith.constant 5.000000e-01 : f32
    %61 = vector.broadcast %cst_37 : f32 to vector<32x128xf32>
    %62 = arith.mulf %61, %60 : vector<32x128xf32>
    %cst_38 = arith.constant 4.471500e-02 : f32
    %63 = vector.broadcast %cst_38 : f32 to vector<32x128xf32>
    %64 = arith.mulf %63, %60 : vector<32x128xf32>
    %65 = arith.mulf %64, %60 : vector<32x128xf32>
    %66 = arith.mulf %65, %60 : vector<32x128xf32>
    %67 = arith.addf %60, %66 : vector<32x128xf32>
    %cst_39 = arith.constant 0.797884583 : f32
    %68 = vector.broadcast %cst_39 : f32 to vector<32x128xf32>
    %69 = arith.mulf %68, %67 : vector<32x128xf32>
    %70 = math.tanh %69 : vector<32x128xf32>
    %cst_40 = arith.constant 1.000000e+00 : f32
    %71 = vector.broadcast %cst_40 : f32 to vector<32x128xf32>
    %72 = arith.addf %71, %70 : vector<32x128xf32>
    %73 = arith.mulf %62, %72 : vector<32x128xf32>
    %74 = arith.addf %6, %73 : vector<32x128xf32>
    %cst_41 = arith.constant 0.707106769 : f32
    %75 = vector.broadcast %cst_41 : f32 to vector<32x128xf32>
    %76 = arith.mulf %74, %75 : vector<32x128xf32>
    %c0_42 = arith.constant 0 : index
    %c0_43 = arith.constant 0 : index
    %77 = vector.load %arg3[%c0_42, %c0_43] : memref<64x32xbf16, #tpu.memory_space<vmem>>, vector<64x32xbf16>
    %78 = arith.truncf %76 : vector<32x128xf32> to vector<32x128xbf16>
    %cst_44 = arith.constant dense<0.000000e+00> : vector<64x128xf32>
    %79 = tpu.matmul %77, %78, %cst_44 {dimension_numbers = #tpu.dot_dimension_numbers<[1], [0], [0], [1], [0, 0, 1, 1], [], []>} : vector<64x32xbf16>, vector<32x128xbf16>, vector<64x128xf32> -> vector<64x128xf32>
    %80 = arith.addf %79, %5 : vector<64x128xf32>
    %cst_45 = arith.constant 5.000000e-01 : f32
    %81 = vector.broadcast %cst_45 : f32 to vector<64x128xf32>
    %82 = arith.mulf %81, %80 : vector<64x128xf32>
    %cst_46 = arith.constant 4.471500e-02 : f32
    %83 = vector.broadcast %cst_46 : f32 to vector<64x128xf32>
    %84 = arith.mulf %83, %80 : vector<64x128xf32>
    %85 = arith.mulf %84, %80 : vector<64x128xf32>
    %86 = arith.mulf %85, %80 : vector<64x128xf32>
    %87 = arith.addf %80, %86 : vector<64x128xf32>
    %cst_47 = arith.constant 0.797884583 : f32
    %88 = vector.broadcast %cst_47 : f32 to vector<64x128xf32>
    %89 = arith.mulf %88, %87 : vector<64x128xf32>
    %90 = math.tanh %89 : vector<64x128xf32>
    %cst_48 = arith.constant 1.000000e+00 : f32
    %91 = vector.broadcast %cst_48 : f32 to vector<64x128xf32>
    %92 = arith.addf %91, %90 : vector<64x128xf32>
    %93 = arith.mulf %82, %92 : vector<64x128xf32>
    %c0_49 = arith.constant 0 : index
    %c0_50 = arith.constant 0 : index
    %94 = vector.load %arg4[%c0_49, %c0_50] : memref<32x64xbf16, #tpu.memory_space<vmem>>, vector<32x64xbf16>
    %95 = arith.truncf %93 : vector<64x128xf32> to vector<64x128xbf16>
    %cst_51 = arith.constant dense<0.000000e+00> : vector<32x128xf32>
    %96 = tpu.matmul %94, %95, %cst_51 {dimension_numbers = #tpu.dot_dimension_numbers<[1], [0], [0], [1], [0, 0, 1, 1], [], []>} : vector<32x64xbf16>, vector<64x128xbf16>, vector<32x128xf32> -> vector<32x128xf32>
    %c1 = arith.constant 1 : index
    %97 = memref.load %arg1[%c1] : memref<2xf32, #tpu.memory_space<smem>>
    %cst_52 = arith.constant 1.000000e+00 : f32
    %98 = arith.addf %cst_52, %97 : f32
    %99 = vector.broadcast %98 : f32 to vector<32x128xf32>
    %100 = arith.mulf %99, %76 : vector<32x128xf32>
    %101 = arith.addf %100, %96 : vector<32x128xf32>
    %102 = arith.truncf %101 : vector<32x128xf32> to vector<32x128xbf16>
    %c1_53 = arith.constant 1 : index
    %c0_54 = arith.constant 0 : index
    %c0_55 = arith.constant 0 : index
    %103 = vector.load %arg8[%c1_53, %c0_54, %c0_55] : memref<2x128x128xbf16, #tpu.memory_space<vmem>>, vector<1x128x128xbf16>
    %104 = vector.shape_cast %103 : vector<1x128x128xbf16> to vector<128x128xbf16>
    %cst_56 = arith.constant dense<0.000000e+00> : vector<32x128xf32>
    %105 = tpu.matmul %102, %104, %cst_56 {dimension_numbers = #tpu.dot_dimension_numbers<[1], [0], [0], [1], [0, 0, 1, 1], [], []>} : vector<32x128xbf16>, vector<128x128xbf16>, vector<32x128xf32> -> vector<32x128xf32>
    %c1_57 = arith.constant 1 : index
    %c0_58 = arith.constant 0 : index
    %c0_59 = arith.constant 0 : index
    %106 = vector.load %arg9[%c1_57, %c0_58, %c0_59] : memref<2x1x128xf32, #tpu.memory_space<vmem>>, vector<1x1x128xf32>
    %107 = vector.shape_cast %106 : vector<1x1x128xf32> to vector<1x128xf32>
    %108 = vector.broadcast %107 : vector<1x128xf32> to vector<32x128xf32>
    %109 = arith.addf %105, %108 : vector<32x128xf32>
    %cst_60 = arith.constant 5.000000e-01 : f32
    %110 = vector.broadcast %cst_60 : f32 to vector<32x128xf32>
    %111 = arith.mulf %110, %109 : vector<32x128xf32>
    %cst_61 = arith.constant 4.471500e-02 : f32
    %112 = vector.broadcast %cst_61 : f32 to vector<32x128xf32>
    %113 = arith.mulf %112, %109 : vector<32x128xf32>
    %114 = arith.mulf %113, %109 : vector<32x128xf32>
    %115 = arith.mulf %114, %109 : vector<32x128xf32>
    %116 = arith.addf %109, %115 : vector<32x128xf32>
    %cst_62 = arith.constant 0.797884583 : f32
    %117 = vector.broadcast %cst_62 : f32 to vector<32x128xf32>
    %118 = arith.mulf %117, %116 : vector<32x128xf32>
    %119 = math.tanh %118 : vector<32x128xf32>
    %cst_63 = arith.constant 1.000000e+00 : f32
    %120 = vector.broadcast %cst_63 : f32 to vector<32x128xf32>
    %121 = arith.addf %120, %119 : vector<32x128xf32>
    %122 = arith.mulf %111, %121 : vector<32x128xf32>
    %123 = arith.truncf %122 : vector<32x128xf32> to vector<32x128xbf16>
    %c1_64 = arith.constant 1 : index
    %c0_65 = arith.constant 0 : index
    %c0_66 = arith.constant 0 : index
    %124 = vector.load %arg10[%c1_64, %c0_65, %c0_66] : memref<2x128x128xbf16, #tpu.memory_space<vmem>>, vector<1x128x128xbf16>
    %125 = vector.shape_cast %124 : vector<1x128x128xbf16> to vector<128x128xbf16>
    %cst_67 = arith.constant dense<0.000000e+00> : vector<32x128xf32>
    %126 = tpu.matmul %123, %125, %cst_67 {dimension_numbers = #tpu.dot_dimension_numbers<[1], [0], [0], [1], [0, 0, 1, 1], [], []>} : vector<32x128xbf16>, vector<128x128xbf16>, vector<32x128xf32> -> vector<32x128xf32>
    %c1_68 = arith.constant 1 : index
    %c0_69 = arith.constant 0 : index
    %c0_70 = arith.constant 0 : index
    %127 = vector.load %arg11[%c1_68, %c0_69, %c0_70] : memref<2x1x128xf32, #tpu.memory_space<vmem>>, vector<1x1x128xf32>
    %128 = vector.shape_cast %127 : vector<1x1x128xf32> to vector<1x128xf32>
    %129 = vector.broadcast %128 : vector<1x128xf32> to vector<32x128xf32>
    %130 = arith.addf %126, %129 : vector<32x128xf32>
    %cst_71 = arith.constant 5.000000e-01 : f32
    %131 = vector.broadcast %cst_71 : f32 to vector<32x128xf32>
    %132 = arith.mulf %131, %130 : vector<32x128xf32>
    %cst_72 = arith.constant 4.471500e-02 : f32
    %133 = vector.broadcast %cst_72 : f32 to vector<32x128xf32>
    %134 = arith.mulf %133, %130 : vector<32x128xf32>
    %135 = arith.mulf %134, %130 : vector<32x128xf32>
    %136 = arith.mulf %135, %130 : vector<32x128xf32>
    %137 = arith.addf %130, %136 : vector<32x128xf32>
    %cst_73 = arith.constant 0.797884583 : f32
    %138 = vector.broadcast %cst_73 : f32 to vector<32x128xf32>
    %139 = arith.mulf %138, %137 : vector<32x128xf32>
    %140 = math.tanh %139 : vector<32x128xf32>
    %cst_74 = arith.constant 1.000000e+00 : f32
    %141 = vector.broadcast %cst_74 : f32 to vector<32x128xf32>
    %142 = arith.addf %141, %140 : vector<32x128xf32>
    %143 = arith.mulf %132, %142 : vector<32x128xf32>
    %144 = arith.addf %76, %143 : vector<32x128xf32>
    %cst_75 = arith.constant 0.707106769 : f32
    %145 = vector.broadcast %cst_75 : f32 to vector<32x128xf32>
    %146 = arith.mulf %144, %145 : vector<32x128xf32>
    %c0_76 = arith.constant 0 : index
    %c0_77 = arith.constant 0 : index
    %147 = vector.load %arg12[%c0_76, %c0_77] : memref<32x128xf32, #tpu.memory_space<vmem>>, vector<32x128xf32>
    tpu.vector_store %arg12[%c0_76, %c0_77], %146 {strides = array<i32>} : memref<32x128xf32, #tpu.memory_space<vmem>>, vector<32x128xf32>,
    return
  }
  func.func @transform_0(%arg0: i32) -> i32 {
    %c0_i32 = arith.constant 0 : i32
    %c0_i32_0 = arith.constant 0 : i32
    return %c0_i32 : i32
  }
  func.func @transform_1(%arg0: i32) -> (i32, i32) {
    %c0_i32 = arith.constant 0 : i32
    %c0_i32_0 = arith.constant 0 : i32
    %c0_i32_1 = arith.constant 0 : i32
    return %c0_i32, %c0_i32_0 : i32, i32
  }
  func.func @transform_2(%arg0: i32) -> (i32, i32) {
    %c0_i32 = arith.constant 0 : i32
    %c0_i32_0 = arith.constant 0 : i32
    %c0_i32_1 = arith.constant 0 : i32
    return %c0_i32, %c0_i32_0 : i32, i32
  }
  func.func @transform_3(%arg0: i32) -> (i32, i32) {
    %c0_i32 = arith.constant 0 : i32
    %c0_i32_0 = arith.constant 0 : i32
    %c0_i32_1 = arith.constant 0 : i32
    return %c0_i32, %c0_i32_0 : i32, i32
  }
  func.func @transform_4(%arg0: i32) -> (i32, i32) {
    %c0_i32 = arith.constant 0 : i32
    %c0_i32_0 = arith.constant 0 : i32
    %c0_i32_1 = arith.constant 0 : i32
    return %c0_i32, %c0_i32_0 : i32, i32
  }
  func.func @transform_5(%arg0: i32) -> (i32, i32) {
    %c0_i32 = arith.constant 0 : i32
    %c0_i32_0 = arith.constant 0 : i32
    %c0_i32_1 = arith.constant 0 : i32
    return %c0_i32, %c0_i32_0 : i32, i32
  }
  func.func @transform_6(%arg0: i32) -> (i32, i32) {
    %c0_i32 = arith.constant 0 : i32
    %c0_i32_0 = arith.constant 0 : i32
    %c0_i32_1 = arith.constant 0 : i32
    return %c0_i32, %c0_i32_0 : i32, i32
  }
  func.func @transform_7(%arg0: i32) -> (i32, i32, i32) {
    %c0_i32 = arith.constant 0 : i32
    %c0_i32_0 = arith.constant 0 : i32
    %c0_i32_1 = arith.constant 0 : i32
    %c0_i32_2 = arith.constant 0 : i32
    return %c0_i32, %c0_i32_0, %c0_i32_1 : i32, i32, i32
  }
  func.func @transform_8(%arg0: i32) -> (i32, i32, i32) {
    %c0_i32 = arith.constant 0 : i32
    %c0_i32_0 = arith.constant 0 : i32
    %c0_i32_1 = arith.constant 0 : i32
    %c0_i32_2 = arith.constant 0 : i32
    return %c0_i32, %c0_i32_0, %c0_i32_1 : i32, i32, i32
  }
  func.func @transform_9(%arg0: i32) -> (i32, i32, i32) {
    %c0_i32 = arith.constant 0 : i32
    %c0_i32_0 = arith.constant 0 : i32
    %c0_i32_1 = arith.constant 0 : i32
    %c0_i32_2 = arith.constant 0 : i32
    return %c0_i32, %c0_i32_0, %c0_i32_1 : i32, i32, i32
  }
  func.func @transform_10(%arg0: i32) -> (i32, i32, i32) {
    %c0_i32 = arith.constant 0 : i32
    %c0_i32_0 = arith.constant 0 : i32
    %c0_i32_1 = arith.constant 0 : i32
    %c0_i32_2 = arith.constant 0 : i32
    return %c0_i32, %c0_i32_0, %c0_i32_1 : i32, i32, i32
  }
  func.func @transform_11(%arg0: i32) -> (i32, i32) {
    %c0_i32 = arith.constant 0 : i32
    %c0_i32_0 = arith.constant 0 : i32
    %c0_i32_1 = arith.constant 0 : i32
    return %c0_i32, %c0_i32_0 : i32, i32
  }
}

</mosaic_0001>

<bundles_post_ra>
// kernel: tpu_custom_call.1
= control target key start
LH: loop header
LB: loop body
LE: loop exit
PB: predicated region body
PF: predicated region fallthrough
CT: control target
= control target key end

     0   :  { %16 = vsyncpa [#allocation5], 0  ;;  %s1799_s0 = inlined_call_operand.vmem [shape: f32[2], index: 0, kind: input, shape index: {}]   ;;  %s1800_s1 = inlined_call_operand.vmem [shape: f32[32,128], index: 1, kind: input, shape index: {}]   ;;  %s1801_s2 = inlined_call_operand.vmem [shape: bf16[64,32], index: 2, kind: input, shape index: {}]   ;;  %s1802_s3 = inlined_call_operand.vmem [shape: bf16[32,64], index: 3, kind: input, shape index: {}]   ;;  %s1803_s4 = inlined_call_operand.vmem [shape: bf16[64,16], index: 4, kind: input, shape index: {}]   ;;  %s1804_s5 = inlined_call_operand.vmem [shape: bf16[16,128], index: 5, kind: input, shape index: {}]   ;;  %s1805_s6 = inlined_call_operand.vmem [shape: f32[1,128], index: 6, kind: input, shape index: {}]   ;;  %s1806_s7 = inlined_call_operand.hbm [shape: bf16[2,128,128], index: 7, kind: input, shape index: {}]   ;;  %s1807_s8 = inlined_call_operand.vmem [shape: f32[2,1,128], index: 8, kind: input, shape index: {}]   ;;  %s1808_s9 = inlined_call_operand.hbm [shape: bf16[2,128,128], index: 9, kind: input, shape index: {}]   ;;  %s1809_s10 = inlined_call_operand.vmem [shape: f32[2,1,128], index: 10, kind: input, shape index: {}]   ;;  %s1810_s11 = inlined_call_operand.hbm [shape: f32[32,128], index: 11, kind: output, shape index: {}]  }
   0x1   :  { %17 = vsyncpa [#allocation3], 0 }
   0x2   :  { %18 = vsyncpa [#allocation8], 0 }
   0x3   :  { %19 = vsyncpa [#allocation4], 0  ;;  %s25_s19 = sshll.u32 %s1799_s0, 4  ;;  %s45_s22 = sshll.u32 %s1806_s7, 4  ;;  %s26_s19 = int_to_ptr.vmem [resolvable:$true] %s25_s19  ;;  %s46_s22 = int_to_ptr.hbm [resolvable:$true] %s45_s22 }
   0x4   :  { %s1463_s23 = smov [#allocation2]   ;;  %s1464_s24 = smov [#allocation6]  }
   0x5   :  { %28 = dma.vmem_to_smem %s26_s19, 16, %s1463_s23, [#allocation5]  }
   0x6   :  { %s47_s25 = sshll.u32 %s1464_s24, 4  ;;  %s1465_s26 = smov 64   ;;  %s48_s25 = int_to_ptr.vmem [resolvable:$true] %s47_s25 }
   0x7   :  { %s1466_s27 = smov 4   ;;  %s60_s30 = sshll.u32 %s1808_s9, 4  ;;  %s61_s30 = int_to_ptr.hbm [resolvable:$true] %s60_s30 }
   0x8   :  { %53 = dma.hbm_to_vmem [thread:$0]  %s46_s22, 2048, %s48_s25, [#allocation3], %s1465_s26, %s1465_s26, %s1466_s27  }
   0x9   :  { %s1467_s0 = smov [#allocation7]  }
   0xa   :  { %s62_s12 = sshll.u32 %s1467_s0, 4  ;;  %s63_s12 = int_to_ptr.vmem [resolvable:$true] %s62_s12 }
   0xb   :  { %68 = dma.hbm_to_vmem [thread:$0]  %s61_s30, 2048, %s63_s12, [#allocation8], %s1465_s26, %s1465_s26, %s1466_s27  }
   0xc   :  { %1455 = dma.done.wait [#allocation5], 16  }
   0xd   :  { %1456 = vsyncadd [#allocation5], 4294967280 }
   0xe   :  { %1457 = dma.done.wait [#allocation3], 2048  }
   0xf   :  { %1458 = vsyncadd [#allocation3], 4294965248 }
  0x10   :  { %1459 = dma.done.wait [#allocation8], 2048  }
  0x11   :  { %1460 = vsyncadd [#allocation8], 4294965248 }
  0x12   :  { %83 = sfence }
  0x13   :  { %v1247_v0 = vld [vmem:[%s1804_s5] sm:$0xff]  ;;  %v1546_v1 = vld [vmem:[%s1800_s1 + $0x10] sm:$0xff]  ;;  %v1551_v2 = vld [vmem:[%s1800_s1 + $0x18] sm:$0xff]  ;;  %vm125_vm0 = vcmask 130048   ;;  %vm201_vm1 = vcmask 261120   ;;  %vm333_vm2 = vcmask 523264  }
  0x14   :  { %v180_v3 = vpack.c.bf16 %v1551_v2, %v1546_v1  ;;  %v1243_v4 = vld [vmem:[%s1803_s4] sm:$0xff]  ;;  %v1566_v6 = vld [vmem:[%s1800_s1 + $0x8] sm:$0xff]  ;;  %145 = vmatpush.bf16.msra.mxu0 %v1247_v0  ;;  %v1245_v11 = vld [vmem:[%s1803_s4 + $0x10] sm:$0xff]  ;;  %s359_s16 = sld [smem:[#allocation2]]  ;;  %s1037_s27 = sshll.u32 %s1810_s11, 4  ;;  %s1038_s27 = int_to_ptr.hbm [resolvable:$true] %s1037_s27 }
  0x15   :  { %v1561_v5 = vld [vmem:[%s1800_s1] sm:$0xff]  ;;  %v1244_v9 = vld [vmem:[%s1803_s4 + $0x8] sm:$0xff]  ;;  %v1596_v12 = vld [vmem:[%s1801_s2 + $0x10] sm:$0xff]  ;;  %s1176_s5 = sld [smem:[#allocation2 + $0x1]]  ;;  %s1469_s28 = smov 128  }
  0x16   :  { %220 = vmatpush.bf16.msra.mxu1 %v180_v3  ;;  %v179_v7 = vpack.c.bf16 %v1566_v6, %v1561_v5  ;;  %v1574_v8 = vld [vmem:[%s1801_s2] sm:$0xff]  ;;  %v1585_v10 = vld [vmem:[%s1801_s2 + $0x8] sm:$0xff]  ;;  %v1246_v13 = vld [vmem:[%s1803_s4 + $0x18] sm:$0xff]  ;;  %s1470_s29 = smov 8  }
  0x17   :  { %1072 = vmatmul.msk.bf16.vlgmr.msra.gmra.mxu0 %vm125_vm0, %v1243_v4  ;;  %v1607_v14 = vld [vmem:[%s1801_s2 + $0x18] sm:$0xff]  ;;  %v1302_v26 = vld [vmem:[%s1805_s6] ss:$0 sm:$0xff] }
  0x1a   :  { %221 = vmatpush.bf16.msra.mxu1 %v179_v7  ;;  %s360_s17 = sadd.f32 1.0, %s359_s16 }
  0x1b   :  { %s755_s21 = sadd.f32 1.0, %s1176_s5 }
  0x1d   :  { %1092 = vmatmul.msk.bf16.vlgmr.msra.gmra.mxu1 %vm201_vm1, %v1574_v8 }
  0x27   :  { %1073 = vmatmul.msk.bf16.gmra.mxu0 %vm125_vm0, %v1244_v9 }
  0x2d   :  { %1093 = vmatmul.msk.bf16.gmra.mxu1 %vm201_vm1, %v1585_v10 }
  0x37   :  { %1074 = vmatmul.msk.bf16.gmra.mxu0 %vm125_vm0, %v1245_v11 }
  0x3d   :  { %1094 = vmatmul.msk.bf16.gmra.mxu1 %vm201_vm1, %v1596_v12 }
  0x47   :  { %1075 = vmatmul.msk.bf16.gmra.mxu0 %vm125_vm0, %v1246_v13 }
  0x4d   :  { %1095 = vmatmul.msk.bf16.gmra.mxu1 %vm201_vm1, %v1607_v14 }
  0x94   :  { %v147_v15 = vpop.f32.mrf.mxu0 }
  0x95   :  { %v1637_v41 = vadd.f32 %v1302_v26, %v147_v15 }
  0x9a   :  { %v223_v16 = vpop.f32.mrf.mxu1 }
  0x9b   :  { %v1650_v50 = vadd.f32 %v223_v16, %v1637_v41 }
  0x9c   :  { %v149_v17 = vpop.f32.mrf.mxu0 }
  0x9d   :  { %v1634_v38 = vadd.f32 %v1302_v26, %v149_v17  ;;  %v251_v60 = vmul.f32 0.044715, %v1650_v50 }
  0x9f   :  { %v259_v16 = vmul.f32 %v251_v60, %v1650_v50 }
  0xa2   :  { %v225_v18 = vpop.f32.mrf.mxu1 }
  0xa3   :  { %v1644_v44 = vadd.f32 %v225_v18, %v1634_v38 }
  0xa4   :  { %v152_v19 = vpop.f32.mrf.mxu0 }
  0xa5   :  { %v1624_v33 = vadd.f32 %v1302_v26, %v152_v19  ;;  %v252_v53 = vmul.f32 0.044715, %v1644_v44 }
  0xa7   :  { %v260_v7 = vmul.f32 %v252_v53, %v1644_v44 }
  0xaa   :  { %v228_v20 = vpop.f32.mrf.mxu1 }
  0xab   :  { %v1640_v42 = vadd.f32 %v228_v20, %v1624_v33  ;;  %v268_v20 = vmul.f32 %v260_v7, %v1644_v44 }
  0xac   :  { %v154_v21 = vpop.f32.mrf.mxu0 }
  0xad   :  { %v1626_v34 = vadd.f32 %v1302_v26, %v154_v21  ;;  %v253_v51 = vmul.f32 0.044715, %v1640_v42 }
  0xaf   :  { %v261_v63 = vmul.f32 %v253_v51, %v1640_v42 }
  0xb1   :  { %v269_v15 = vmul.f32 %v261_v63, %v1640_v42 }
  0xb2   :  { %v230_v22 = vpop.f32.mrf.mxu1 }
  0xb3   :  { %v1631_v36 = vadd.f32 %v230_v22, %v1626_v34 }
  0xb4   :  { %v157_v23 = vpop.f32.mrf.mxu0 }
  0xb5   :  { %v1614_v27 = vadd.f32 %v1302_v26, %v157_v23  ;;  %v254_v45 = vmul.f32 0.044715, %v1631_v36  ;;  %v277_v23 = vadd.f32 %v269_v15, %v1640_v42  ;;  %v1260_v15 = vld [vmem:[#allocation6 + $0x30] sm:$0xff] }
  0xb7   :  { %v262_v57 = vmul.f32 %v254_v45, %v1631_v36 }
  0xb9   :  { %v270_v4 = vmul.f32 %v262_v57, %v1631_v36 }
  0xba   :  { %v233_v24 = vpop.f32.mrf.mxu1 }
  0xbb   :  { %v1622_v32 = vadd.f32 %v233_v24, %v1614_v27  ;;  %v278_v19 = vadd.f32 %v270_v4, %v1631_v36  ;;  %v267_v24 = vmul.f32 %v259_v16, %v1650_v50 }
  0xbc   :  { %v159_v25 = vpop.f32.mrf.mxu0 }
  0xbd   :  { %v1616_v29 = vadd.f32 %v1302_v26, %v159_v25  ;;  %v255_v39 = vmul.f32 0.044715, %v1622_v32 }
  0xbf   :  { %v263_v49 = vmul.f32 %v255_v39, %v1622_v32 }
  0xc1   :  { %v271_v59 = vmul.f32 %v263_v49, %v1622_v32 }
  0xc2   :  { %v235_v28 = vpop.f32.mrf.mxu1 }
  0xc3   :  { %v1619_v30 = vadd.f32 %v235_v28, %v1616_v29  ;;  %v279_v9 = vadd.f32 %v271_v59, %v1622_v32  ;;  %v276_v28 = vadd.f32 %v268_v20, %v1644_v44 }
  0xc4   :  { %v162_v31 = vpop.f32.mrf.mxu0 }
  0xc5   :  { %v1628_v35 = vadd.f32 %v1302_v26, %v162_v31  ;;  %v256_v37 = vmul.f32 0.044715, %v1619_v30  ;;  %v287_v21 = vmul.f32 0.7978846, %v279_v9  ;;  %v285_v31 = vmul.f32 0.7978846, %v277_v23 }
  0xc6   :  { %v248_v59 = vmul.f32 0.5, %v1619_v30  ;;  %v1261_v9 = vld [vmem:[#allocation6 + $0x38] sm:$0xff] }
  0xc7   :  { %v264_v47 = vmul.f32 %v256_v37, %v1619_v30  ;;  %v275_v37 = vadd.f32 %v267_v24, %v1650_v50  ;;  %440 = vmatpush.bf16.msrb.mxu0 %v1261_v9  ;;  %1286 = vmatpush.bf16.msra.mxu3 %v1261_v9  ;;  %v1303_v9 = vld [vmem:[%s1807_s8] ss:$0 sm:$0xff] }
  0xc9   :  { %v272_v56 = vmul.f32 %v264_v47, %v1619_v30 }
  0xca   :  { %v238_v40 = vpop.f32.mrf.mxu1 }
  0xcb   :  { %v239_v43 = vadd.f32 %v238_v40, %v1628_v35  ;;  %v280_v3 = vadd.f32 %v272_v56, %v1619_v30  ;;  %v284_v40 = vmul.f32 0.7978846, %v276_v28  ;;  %v245_v30 = vmul.f32 0.5, %v1640_v42  ;;  %441 = vmatpush.bf16.msrb.mxu0 %v1260_v15  ;;  %1287 = vmatpush.bf16.msra.mxu3 %v1260_v15  ;;  %v1256_v28 = vld [vmem:[#allocation6 + $0x10] sm:$0xff] }
  0xcc   :  { %v164_v48 = vpop.f32.mrf.mxu0 }
  0xcd   :  { %v257_v46 = vmul.f32 0.044715, %v239_v43  ;;  %v1654_v54 = vadd.f32 %v1302_v26, %v164_v48  ;;  %v288_v18 = vmul.f32 0.7978846, %v280_v3  ;;  %v286_v26 = vmul.f32 0.7978846, %v278_v19 }
  0xce   :  { %v249_v51 = vmul.f32 0.5, %v239_v43  ;;  %v244_v19 = vmul.f32 0.5, %v1644_v44  ;;  %v1257_v44 = vld [vmem:[#allocation6 + $0x18] sm:$0xff] }
  0xcf   :  { %v265_v52 = vmul.f32 %v257_v46, %v239_v43  ;;  %v283_v46 = vmul.f32 0.7978846, %v275_v37  ;;  %v1254_v37 = vld [vmem:[#allocation6] sm:$0xff] }
  0xd1   :  { %v273_v55 = vmul.f32 %v265_v52, %v239_v43 }
  0xd2   :  { %v240_v58 = vpop.f32.mrf.mxu1 }
  0xd3   :  { %v241_v61 = vadd.f32 %v240_v58, %v1654_v54  ;;  %v281_v62 = vadd.f32 %v273_v55, %v239_v43 }
  0xd5   :  { %v258_v0 = vmul.f32 0.044715, %v241_v61  ;;  %v289_v13 = vmul.f32 0.7978846, %v281_v62  ;;  %v250_v52 = vmul.f32 0.5, %v241_v61 }
  0xd7   :  { %v266_v11 = vmul.f32 %v258_v0, %v241_v61  ;;  %1307 = vtanh.f32 %v289_v13  ;;  %v247_v0 = vmul.f32 0.5, %v1622_v32 }
  0xd8   :  { %1309 = vtanh.f32 %v288_v18 }
  0xd9   :  { %v274_v17 = vmul.f32 %v266_v11, %v241_v61  ;;  %1311 = vtanh.f32 %v287_v21  ;;  %v1259_v21 = vld [vmem:[#allocation6 + $0x28] sm:$0xff] }
  0xda   :  { %442 = vmatpush.bf16.msrb.mxu0 %v1259_v21  ;;  %1288 = vmatpush.bf16.msra.mxu3 %v1259_v21 }
  0xdb   :  { %v282_v22 = vadd.f32 %v274_v17, %v241_v61  ;;  %v246_v61 = vmul.f32 0.5, %v1631_v36  ;;  %v243_v36 = vmul.f32 0.5, %v1650_v50  ;;  %v1690_v50 = vld [vmem:[%s1802_s3 + $0x8] sm:$0xff] }
  0xdd   :  { %v290_v25 = vmul.f32 0.7978846, %v282_v22  ;;  %v1308_v39 = vpop.eup %1307 }
  0xde   :  { %v1310_v45 = vpop.eup %1309  ;;  %v305_v48 = vadd.f32 1.0, %v1308_v39 }
  0xdf   :  { %1313 = vtanh.f32 %v290_v25  ;;  %v1312_v47 = vpop.eup %1311  ;;  %v304_v55 = vadd.f32 1.0, %v1310_v45  ;;  %v1258_v25 = vld [vmem:[#allocation6 + $0x20] sm:$0xff] }
  0xe0   :  { %1315 = vtanh.f32 %v286_v26  ;;  %v313_v57 = vmul.f32 %v305_v48, %v249_v51  ;;  %v303_v60 = vadd.f32 1.0, %v1312_v47  ;;  %v1683_v26 = vld [vmem:[%s1802_s3] sm:$0xff]  ;;  %443 = vmatpush.bf16.msrb.mxu0 %v1258_v25  ;;  %1289 = vmatpush.bf16.msra.mxu3 %v1258_v25 }
  0xe1   :  { %1317 = vtanh.f32 %v285_v31  ;;  %v312_v3 = vmul.f32 %v304_v55, %v248_v59  ;;  %v1255_v31 = vld [vmem:[#allocation6 + $0x8] sm:$0xff] }
  0xe2   :  { %1319 = vtanh.f32 %v284_v40  ;;  %v311_v43 = vmul.f32 %v303_v60, %v247_v0  ;;  %v361_v40 = vstv %s360_s17  ;;  %v1269_v60 = vld [vmem:[#allocation7 + $0x38] sm:$0xff]  ;;  %v1266_v0 = vld [vmem:[#allocation7 + $0x20] sm:$0xff] }
  0xe3   :  { %1321 = vtanh.f32 %v283_v46  ;;  %v362_v45 = vmul.f32 %v361_v40, %v1561_v5  ;;  %v363_v46 = vmul.f32 %v361_v40, %v1566_v6  ;;  %v365_v55 = vmul.f32 %v361_v40, %v1551_v2 }
  0xe4   :  { %v321_v16 = vpack.c.bf16 %v312_v3, %v311_v43  ;;  %444 = vmatpush.bf16.msrb.mxu0 %v1257_v44  ;;  %1290 = vmatpush.bf16.msra.mxu3 %v1257_v44  ;;  %v1265_v3 = vld [vmem:[#allocation7 + $0x18] sm:$0xff]  ;;  %v1262_v43 = vld [vmem:[#allocation7] sm:$0xff] }
  0xe5   :  { %v1314_v49 = vpop.eup %1313 }
  0xe6   :  { %v306_v53 = vadd.f32 1.0, %v1314_v49  ;;  %v1316_v56 = vpop.eup %1315 }
  0xe7   :  { %v1318_v62 = vpop.eup %1317  ;;  %v302_v4 = vadd.f32 1.0, %v1316_v56 }
  0xe8   :  { %v314_v58 = vmul.f32 %v306_v53, %v250_v52  ;;  %v1320_v7 = vpop.eup %1319  ;;  %v301_v11 = vadd.f32 1.0, %v1318_v62  ;;  %445 = vmatpush.bf16.msrb.mxu0 %v1256_v28  ;;  %1291 = vmatpush.bf16.msra.mxu3 %v1256_v28  ;;  %v364_v53 = vmul.f32 %v361_v40, %v1546_v1  ;;  %v1268_v62 = vld [vmem:[#allocation7 + $0x30] sm:$0xff] }
  0xe9   :  { %v1322_v13 = vpop.eup %1321  ;;  %v310_v17 = vmul.f32 %v302_v4, %v246_v61  ;;  %v300_v18 = vadd.f32 1.0, %v1320_v7  ;;  %v1264_v4 = vld [vmem:[#allocation7 + $0x10] sm:$0xff]  ;;  %v1263_v7 = vld [vmem:[#allocation7 + $0x8] sm:$0xff] }
  0xea   :  { %v322_v63 = vpack.c.bf16 %v314_v58, %v313_v57  ;;  %v309_v32 = vmul.f32 %v301_v11, %v245_v30  ;;  %v299_v20 = vadd.f32 1.0, %v1322_v13 }
  0xeb   :  { %v308_v23 = vmul.f32 %v300_v18, %v244_v19 }
  0xec   :  { %344 = vmatpush.bf16.msra.mxu2 %v322_v63  ;;  %v320_v22 = vpack.c.bf16 %v310_v17, %v309_v32  ;;  %v307_v24 = vmul.f32 %v299_v20, %v243_v36  ;;  %446 = vmatpush.bf16.msrb.mxu0 %v1255_v31  ;;  %v1267_v63 = vld [vmem:[#allocation7 + $0x28] sm:$0xff] }
  0xed   :  { %1292 = vmatpush.bf16.msra.mxu3 %v1255_v31 }
  0xee   :  { %v319_v42 = vpack.c.bf16 %v308_v23, %v307_v24 }
  0xf0   :  { %345 = vmatpush.bf16.msra.mxu2 %v321_v16  ;;  %447 = vmatpush.bf16.msrb.mxu0 %v1254_v37 }
  0xf1   :  { %1293 = vmatpush.bf16.msra.mxu3 %v1254_v37 }
  0xf4   :  { %346 = vmatpush.bf16.msra.mxu2 %v320_v22 }
  0xf8   :  { %347 = vmatpush.bf16.msra.mxu2 %v319_v42 }
  0xfb   :  { %1104 = vmatmul.msk.bf16.vlgmr.msra.gmra.mxu2 %vm333_vm2, %v1683_v26 }
  0xfc   :  { %565 = vmatpush.bf16.msrb.mxu2 %v1269_v60 }
 0x100   :  { %566 = vmatpush.bf16.msrb.mxu2 %v1268_v62 }
 0x104   :  { %567 = vmatpush.bf16.msrb.mxu2 %v1267_v63 }
 0x108   :  { %568 = vmatpush.bf16.msrb.mxu2 %v1266_v0 }
 0x10b   :  { %1105 = vmatmul.msk.bf16.gmra.mxu2 %vm333_vm2, %v1690_v50 }
 0x10c   :  { %569 = vmatpush.bf16.msrb.mxu2 %v1265_v3 }
 0x110   :  { %570 = vmatpush.bf16.msrb.mxu2 %v1264_v4 }
 0x114   :  { %571 = vmatpush.bf16.msrb.mxu2 %v1263_v7 }
 0x118   :  { %572 = vmatpush.bf16.msrb.mxu2 %v1262_v43 }
 0x17e   :  { %v349_v39 = vpop.f32.mrf.mxu2 }
 0x17f   :  { %v366_v48 = vadd.f32 %v362_v45, %v349_v39 }
 0x186   :  { %v351_v47 = vpop.f32.mrf.mxu2 }
 0x187   :  { %v367_v49 = vadd.f32 %v363_v46, %v351_v47 }
 0x189   :  { %v370_v51 = vpack.c.bf16 %v367_v49, %v366_v48 }
 0x18b   :  { %448 = vmatmul.bf16.vlgmr.msrb.gmra.mxu0 %v370_v51 }
 0x18e   :  { %v354_v52 = vpop.f32.mrf.mxu2 }
 0x18f   :  { %v368_v57 = vadd.f32 %v364_v53, %v354_v52 }
 0x196   :  { %v356_v56 = vpop.f32.mrf.mxu2 }
 0x197   :  { %v369_v58 = vadd.f32 %v365_v55, %v356_v56 }
 0x199   :  { %v371_v59 = vpack.c.bf16 %v369_v58, %v368_v57 }
 0x19b   :  { %453 = vmatmul.bf16.vlgmr.msra.gmra.mxu3 %v371_v59 }
 0x208   :  { %v449_v61 = vpop.f32.mrf.mxu0 }
 0x209   :  { %v450_v11 = vadd.f32 %v1303_v9, %v449_v61 }
 0x20b   :  { %v463_v13 = vmul.f32 0.044715, %v450_v11  ;;  %v459_v37 = vmul.f32 0.5, %v450_v11 }
 0x20d   :  { %v467_v15 = vmul.f32 %v463_v13, %v450_v11  ;;  %v1304_v13 = vld [vmem:[%s1809_s10] ss:$0 sm:$0xff] }
 0x20f   :  { %v471_v16 = vmul.f32 %v467_v15, %v450_v11 }
 0x210   :  { %v451_v30 = vpop.f32.mrf.mxu0 }
 0x211   :  { %v452_v17 = vadd.f32 %v1303_v9, %v451_v30  ;;  %v475_v18 = vadd.f32 %v471_v16, %v450_v11 }
 0x213   :  { %v464_v32 = vmul.f32 0.044715, %v452_v17  ;;  %v479_v20 = vmul.f32 0.7978846, %v475_v18  ;;  %v460_v39 = vmul.f32 0.5, %v452_v17 }
 0x215   :  { %v468_v19 = vmul.f32 %v464_v32, %v452_v17  ;;  %1323 = vtanh.f32 %v479_v20 }
 0x217   :  { %v472_v21 = vmul.f32 %v468_v19, %v452_v17 }
 0x219   :  { %v476_v22 = vadd.f32 %v472_v21, %v452_v17 }
 0x21b   :  { %v480_v36 = vmul.f32 0.7978846, %v476_v22  ;;  %v1324_v24 = vpop.eup %1323 }
 0x21c   :  { %v487_v44 = vadd.f32 1.0, %v1324_v24 }
 0x21d   :  { %1325 = vtanh.f32 %v480_v36 }
 0x21e   :  { %v454_v23 = vpop.f32.mrf.mxu3  ;;  %v491_v47 = vmul.f32 %v487_v44, %v459_v37 }
 0x21f   :  { %v455_v25 = vadd.f32 %v1303_v9, %v454_v23 }
 0x221   :  { %v465_v42 = vmul.f32 0.044715, %v455_v25  ;;  %v461_v0 = vmul.f32 0.5, %v455_v25 }
 0x223   :  { %v1326_v28 = vpop.eup %1325  ;;  %v469_v31 = vmul.f32 %v465_v42, %v455_v25 }
 0x224   :  { %v488_v40 = vadd.f32 1.0, %v1326_v28 }
 0x225   :  { %v473_v45 = vmul.f32 %v469_v31, %v455_v25 }
 0x226   :  { %v456_v46 = vpop.f32.mrf.mxu3  ;;  %v492_v48 = vmul.f32 %v488_v40, %v460_v39 }
 0x227   :  { %v457_v49 = vadd.f32 %v1303_v9, %v456_v46  ;;  %v477_v51 = vadd.f32 %v473_v45, %v455_v25 }
 0x228   :  { %v495_v52 = vpack.c.bf16 %v492_v48, %v491_v47 }
 0x229   :  { %v466_v53 = vmul.f32 0.044715, %v457_v49  ;;  %v481_v56 = vmul.f32 0.7978846, %v477_v51  ;;  %v462_v3 = vmul.f32 0.5, %v457_v49 }
 0x22a   :  { %573 = vmatmul.bf16.vlgmr.msrb.gmra.mxu2 %v495_v52 }
 0x22b   :  { %v470_v55 = vmul.f32 %v466_v53, %v457_v49  ;;  %1327 = vtanh.f32 %v481_v56 }
 0x22d   :  { %v474_v57 = vmul.f32 %v470_v55, %v457_v49 }
 0x22f   :  { %v478_v58 = vadd.f32 %v474_v57, %v457_v49 }
 0x231   :  { %v482_v59 = vmul.f32 0.7978846, %v478_v58  ;;  %v1328_v60 = vpop.eup %1327 }
 0x232   :  { %v489_v62 = vadd.f32 1.0, %v1328_v60 }
 0x233   :  { %1329 = vtanh.f32 %v482_v59 }
 0x234   :  { %v493_v7 = vmul.f32 %v489_v62, %v461_v0 }
 0x239   :  { %v1330_v63 = vpop.eup %1329 }
 0x23a   :  { %v490_v4 = vadd.f32 1.0, %v1330_v63 }
 0x23c   :  { %v494_v43 = vmul.f32 %v490_v4, %v462_v3 }
 0x23e   :  { %v496_v9 = vpack.c.bf16 %v494_v43, %v493_v7 }
 0x240   :  { %578 = vmatmul.bf16.gmra.mxu2 %v496_v9 }
 0x2ad   :  { %v574_v61 = vpop.f32.mrf.mxu2 }
 0x2ae   :  { %v575_v16 = vadd.f32 %v1304_v13, %v574_v61 }
 0x2b0   :  { %v588_v17 = vmul.f32 0.044715, %v575_v16  ;;  %v584_v3 = vmul.f32 0.5, %v575_v16 }
 0x2b2   :  { %v592_v19 = vmul.f32 %v588_v17, %v575_v16 }
 0x2b4   :  { %v596_v36 = vmul.f32 %v592_v19, %v575_v16 }
 0x2b5   :  { %v576_v11 = vpop.f32.mrf.mxu2 }
 0x2b6   :  { %v577_v15 = vadd.f32 %v1304_v13, %v576_v11  ;;  %v600_v44 = vadd.f32 %v596_v36, %v575_v16 }
 0x2b8   :  { %v589_v30 = vmul.f32 0.044715, %v577_v15  ;;  %v604_v46 = vmul.f32 0.7978846, %v600_v44  ;;  %v585_v59 = vmul.f32 0.5, %v577_v15 }
 0x2ba   :  { %v593_v18 = vmul.f32 %v589_v30, %v577_v15 }
 0x2bc   :  { %v597_v21 = vmul.f32 %v593_v18, %v577_v15 }
 0x2be   :  { %v601_v24 = vadd.f32 %v597_v21, %v577_v15 }
 0x2c0   :  { %v605_v40 = vmul.f32 0.7978846, %v601_v24 }
 0x2c3   :  { %v579_v32 = vpop.f32.mrf.mxu2 }
 0x2c4   :  { %v580_v20 = vadd.f32 %v1304_v13, %v579_v32 }
 0x2c6   :  { %v590_v22 = vmul.f32 0.044715, %v580_v20  ;;  %v586_v56 = vmul.f32 0.5, %v580_v20 }
 0x2c8   :  { %v594_v23 = vmul.f32 %v590_v22, %v580_v20 }
 0x2ca   :  { %v598_v25 = vmul.f32 %v594_v23, %v580_v20 }
 0x2cb   :  { %v581_v42 = vpop.f32.mrf.mxu2 }
 0x2cc   :  { %v602_v28 = vadd.f32 %v598_v25, %v580_v20  ;;  %v582_v31 = vadd.f32 %v1304_v13, %v581_v42 }
 0x2ce   :  { %v591_v37 = vmul.f32 0.044715, %v582_v31  ;;  %v606_v39 = vmul.f32 0.7978846, %v602_v28  ;;  %v587_v63 = vmul.f32 0.5, %v582_v31 }
 0x2d0   :  { %v595_v45 = vmul.f32 %v591_v37, %v582_v31  ;;  %1331 = vtanh.f32 %v606_v39 }
 0x2d1   :  { %1333 = vtanh.f32 %v605_v40 }
 0x2d2   :  { %v599_v47 = vmul.f32 %v595_v45, %v582_v31  ;;  %1335 = vtanh.f32 %v604_v46 }
 0x2d4   :  { %v603_v48 = vadd.f32 %v599_v47, %v582_v31 }
 0x2d6   :  { %v1332_v49 = vpop.eup %1331  ;;  %v607_v51 = vmul.f32 0.7978846, %v603_v48 }
 0x2d7   :  { %v1334_v52 = vpop.eup %1333  ;;  %v614_v53 = vadd.f32 1.0, %v1332_v49 }
 0x2d8   :  { %1337 = vtanh.f32 %v607_v51  ;;  %v1336_v55 = vpop.eup %1335  ;;  %v613_v57 = vadd.f32 1.0, %v1334_v52 }
 0x2d9   :  { %v618_v58 = vmul.f32 %v614_v53, %v586_v56  ;;  %v612_v60 = vadd.f32 1.0, %v1336_v55 }
 0x2da   :  { %v617_v4 = vmul.f32 %v613_v57, %v585_v59 }
 0x2db   :  { %v622_v43 = vadd.f32 %v618_v58, %v1546_v1  ;;  %v616_v9 = vmul.f32 %v612_v60, %v584_v3 }
 0x2dc   :  { %v621_v11 = vadd.f32 %v617_v4, %v1566_v6 }
 0x2dd   :  { %v1707_v13 = vmul.f32 0.70710677, %v622_v43  ;;  %v620_v15 = vadd.f32 %v616_v9, %v1561_v5 }
 0x2de   :  { %v1338_v62 = vpop.eup %1337  ;;  %v1714_v18 = vmul.f32 0.70710677, %v621_v11 }
 0x2df   :  { %v615_v0 = vadd.f32 1.0, %v1338_v62  ;;  %v1716_v16 = vmul.f32 0.70710677, %v620_v15 }
 0x2e1   :  { %v619_v7 = vmul.f32 %v615_v0, %v587_v63  ;;  %v628_v1 = vpack.c.bf16 %v1714_v18, %v1716_v16 }
 0x2e3   :  { %v623_v61 = vadd.f32 %v619_v7, %v1551_v2 }
 0x2e5   :  { %v1709_v30 = vmul.f32 0.70710677, %v623_v61 }
 0x2e7   :  { %v629_v17 = vpack.c.bf16 %v1709_v30, %v1707_v13 }
 0x2e9   :  { %636 = vmatpush.bf16.msrb.mxu3 %v629_v17 }
 0x2ed   :  { %637 = vmatpush.bf16.msrb.mxu3 %v628_v1 }
 0x2f0   :  { %1170 = vmatmul.msk.bf16.vlgmr.msrb.gmra.mxu3 %vm201_vm1, %v1574_v8 }
 0x300   :  { %1171 = vmatmul.msk.bf16.gmra.mxu3 %vm201_vm1, %v1585_v10 }
 0x310   :  { %1172 = vmatmul.msk.bf16.gmra.mxu3 %vm201_vm1, %v1596_v12 }
 0x320   :  { %1173 = vmatmul.msk.bf16.gmra.mxu3 %vm201_vm1, %v1607_v14 }
 0x373   :  { %v639_v2 = vpop.f32.mrf.mxu3 }
 0x374   :  { %v1750_v42 = vadd.f32 %v639_v2, %v1637_v41 }
 0x376   :  { %v667_v40 = vmul.f32 0.044715, %v1750_v42 }
 0x378   :  { %v675_v53 = vmul.f32 %v667_v40, %v1750_v42 }
 0x37a   :  { %v683_v3 = vmul.f32 %v675_v53, %v1750_v42  ;;  %v659_v53 = vmul.f32 0.5, %v1750_v42 }
 0x37b   :  { %v641_v5 = vpop.f32.mrf.mxu3 }
 0x37c   :  { %v1744_v24 = vadd.f32 %v641_v5, %v1634_v38  ;;  %v691_v61 = vadd.f32 %v683_v3, %v1750_v42  ;;  %v1270_v42 = vld [vmem:[#allocation6 + $0x40] sm:$0xff] }
 0x37e   :  { %v699_v1 = vmul.f32 0.7978846, %v691_v61 }
 0x383   :  { %v644_v6 = vpop.f32.mrf.mxu3 }
 0x384   :  { %v1740_v36 = vadd.f32 %v644_v6, %v1624_v33  ;;  %v668_v33 = vmul.f32 0.044715, %v1744_v24 }
 0x386   :  { %v669_v44 = vmul.f32 0.044715, %v1740_v36  ;;  %v676_v47 = vmul.f32 %v668_v33, %v1744_v24 }
 0x388   :  { %v677_v45 = vmul.f32 %v669_v44, %v1740_v36 }
 0x38a   :  { %v685_v57 = vmul.f32 %v677_v45, %v1740_v36  ;;  %v1276_v45 = vld [vmem:[#allocation6 + $0x70] sm:$0xff] }
 0x38b   :  { %v646_v32 = vpop.f32.mrf.mxu3 }
 0x38c   :  { %v1735_v10 = vadd.f32 %v646_v32, %v1626_v34  ;;  %v693_v0 = vadd.f32 %v685_v57, %v1740_v36 }
 0x38e   :  { %v701_v9 = vmul.f32 0.7978846, %v693_v0 }
 0x393   :  { %v649_v19 = vpop.f32.mrf.mxu3 }
 0x394   :  { %v1732_v8 = vadd.f32 %v649_v19, %v1614_v27 }
 0x396   :  { %v671_v22 = vmul.f32 0.044715, %v1732_v8 }
 0x398   :  { %v679_v34 = vmul.f32 %v671_v22, %v1732_v8 }
 0x39a   :  { %v687_v39 = vmul.f32 %v679_v34, %v1732_v8 }
 0x39b   :  { %v651_v20 = vpop.f32.mrf.mxu3 }
 0x39c   :  { %v1729_v21 = vadd.f32 %v651_v20, %v1616_v29  ;;  %v670_v29 = vmul.f32 0.044715, %v1735_v10  ;;  %v695_v52 = vadd.f32 %v687_v39, %v1732_v8 }
 0x39e   :  { %v672_v12 = vmul.f32 0.044715, %v1729_v21  ;;  %v703_v62 = vmul.f32 0.7978846, %v695_v52 }
 0x3a0   :  { %v680_v27 = vmul.f32 %v672_v12, %v1729_v21 }
 0x3a2   :  { %v688_v38 = vmul.f32 %v680_v27, %v1729_v21  ;;  %v664_v27 = vmul.f32 0.5, %v1729_v21 }
 0x3a3   :  { %v654_v14 = vpop.f32.mrf.mxu3 }
 0x3a4   :  { %v655_v23 = vadd.f32 %v654_v14, %v1628_v35  ;;  %v678_v35 = vmul.f32 %v670_v29, %v1735_v10  ;;  %v696_v49 = vadd.f32 %v688_v38, %v1729_v21  ;;  %v1277_v38 = vld [vmem:[#allocation6 + $0x78] sm:$0xff]  ;;  %v661_v21 = vmul.f32 0.5, %v1740_v36 }
 0x3a5   :  { %837 = vmatpush.bf16.msrb.mxu1 %v1277_v38  ;;  %v1273_v36 = vld [vmem:[#allocation6 + $0x58] sm:$0xff] }
 0x3a6   :  { %v673_v25 = vmul.f32 0.044715, %v655_v23  ;;  %v686_v51 = vmul.f32 %v678_v35, %v1735_v10  ;;  %v704_v59 = vmul.f32 0.7978846, %v696_v49  ;;  %v665_v32 = vmul.f32 0.5, %v655_v23 }
 0x3a8   :  { %v681_v28 = vmul.f32 %v673_v25, %v655_v23  ;;  %v694_v60 = vadd.f32 %v686_v51, %v1735_v10  ;;  %v1275_v51 = vld [vmem:[#allocation6 + $0x68] sm:$0xff] }
 0x3a9   :  { %838 = vmatpush.bf16.msrb.mxu1 %v1276_v45 }
 0x3aa   :  { %v689_v31 = vmul.f32 %v681_v28, %v655_v23  ;;  %v702_v7 = vmul.f32 0.7978846, %v694_v60  ;;  %v663_v28 = vmul.f32 0.5, %v1732_v8  ;;  %v660_v8 = vmul.f32 0.5, %v1744_v24 }
 0x3ab   :  { %v656_v37 = vpop.f32.mrf.mxu3  ;;  %v756_v60 = vstv %s755_s21 }
 0x3ac   :  { %v697_v46 = vadd.f32 %v689_v31, %v655_v23  ;;  %v657_v41 = vadd.f32 %v656_v37, %v1654_v54  ;;  %v684_v54 = vmul.f32 %v676_v47, %v1744_v24  ;;  %v662_v37 = vmul.f32 0.5, %v1735_v10 }
 0x3ad   :  { %839 = vmatpush.bf16.msrb.mxu1 %v1275_v51 }
 0x3ae   :  { %v674_v48 = vmul.f32 0.044715, %v657_v41  ;;  %v705_v55 = vmul.f32 0.7978846, %v697_v46  ;;  %v692_v43 = vadd.f32 %v684_v54, %v1744_v24  ;;  %v666_v19 = vmul.f32 0.5, %v657_v41  ;;  %v1272_v24 = vld [vmem:[#allocation6 + $0x50] sm:$0xff] }
 0x3af   :  { %v757_v54 = vmul.f32 %v756_v60, %v1716_v16 }
 0x3b0   :  { %v682_v56 = vmul.f32 %v674_v48, %v657_v41  ;;  %1339 = vtanh.f32 %v705_v55  ;;  %v700_v15 = vmul.f32 0.7978846, %v692_v43 }
 0x3b1   :  { %1341 = vtanh.f32 %v704_v59 }
 0x3b2   :  { %v690_v58 = vmul.f32 %v682_v56, %v657_v41  ;;  %1343 = vtanh.f32 %v703_v62  ;;  %v1274_v56 = vld [vmem:[#allocation6 + $0x60] sm:$0xff]  ;;  %v758_v62 = vmul.f32 %v756_v60, %v1714_v18 }
 0x3b3   :  { %840 = vmatpush.bf16.msrb.mxu1 %v1274_v56 }
 0x3b4   :  { %v698_v63 = vadd.f32 %v690_v58, %v657_v41  ;;  %v1271_v58 = vld [vmem:[#allocation6 + $0x48] sm:$0xff] }
 0x3b6   :  { %v706_v4 = vmul.f32 0.7978846, %v698_v63  ;;  %v1340_v11 = vpop.eup %1339 }
 0x3b7   :  { %v1342_v17 = vpop.eup %1341  ;;  %v721_v5 = vadd.f32 1.0, %v1340_v11  ;;  %841 = vmatpush.bf16.msrb.mxu1 %v1273_v36 }
 0x3b8   :  { %1345 = vtanh.f32 %v706_v4  ;;  %v1344_v2 = vpop.eup %1343  ;;  %v720_v12 = vadd.f32 1.0, %v1342_v17  ;;  %v1284_v17 = vld [vmem:[#allocation7 + $0x70] sm:$0xff] }
 0x3b9   :  { %1347 = vtanh.f32 %v702_v7  ;;  %v729_v14 = vmul.f32 %v721_v5, %v665_v32  ;;  %v719_v25 = vadd.f32 1.0, %v1344_v2  ;;  %v760_v7 = vmul.f32 %v756_v60, %v1709_v30  ;;  %v1282_v2 = vld [vmem:[#allocation7 + $0x60] sm:$0xff]  ;;  %v1281_v5 = vld [vmem:[#allocation7 + $0x58] sm:$0xff]  ;;  %v1279_v32 = vld [vmem:[#allocation7 + $0x48] sm:$0xff] }
 0x3ba   :  { %1349 = vtanh.f32 %v701_v9  ;;  %v728_v33 = vmul.f32 %v720_v12, %v664_v27 }
 0x3bb   :  { %1351 = vtanh.f32 %v700_v15  ;;  %v727_v23 = vmul.f32 %v719_v25, %v663_v28  ;;  %842 = vmatpush.bf16.msrb.mxu1 %v1272_v24  ;;  %v1285_v15 = vld [vmem:[#allocation7 + $0x78] sm:$0xff] }
 0x3bc   :  { %1353 = vtanh.f32 %v699_v1  ;;  %964 = vmatpush.bf16.msra.mxu2 %v1285_v15  ;;  %v1283_v1 = vld [vmem:[#allocation7 + $0x68] sm:$0xff] }
 0x3bd   :  { %v733_v46 = vpack.c.bf16 %v728_v33, %v727_v23 }
 0x3be   :  { %v1346_v6 = vpop.eup %1345 }
 0x3bf   :  { %v722_v20 = vadd.f32 1.0, %v1346_v6  ;;  %v1348_v22 = vpop.eup %1347  ;;  %843 = vmatpush.bf16.msrb.mxu1 %v1271_v58  ;;  %v1280_v6 = vld [vmem:[#allocation7 + $0x50] sm:$0xff] }
 0x3c0   :  { %v1350_v34 = vpop.eup %1349  ;;  %v718_v35 = vadd.f32 1.0, %v1348_v22  ;;  %965 = vmatpush.bf16.msra.mxu2 %v1284_v17 }
 0x3c1   :  { %v730_v29 = vmul.f32 %v722_v20, %v666_v19  ;;  %v1352_v31 = vpop.eup %1351  ;;  %v717_v39 = vadd.f32 1.0, %v1350_v34  ;;  %v1278_v19 = vld [vmem:[#allocation7 + $0x40] sm:$0xff] }
 0x3c2   :  { %v1354_v40 = vpop.eup %1353  ;;  %v726_v41 = vmul.f32 %v718_v35, %v662_v37  ;;  %v716_v47 = vadd.f32 1.0, %v1352_v31  ;;  %v1305_v20 = vld [vmem:[%s1807_s8 + $0x1] ss:$0 sm:$0xff] }
 0x3c3   :  { %v734_v44 = vpack.c.bf16 %v730_v29, %v729_v14  ;;  %v725_v48 = vmul.f32 %v717_v39, %v661_v21  ;;  %v715_v49 = vadd.f32 1.0, %v1354_v40  ;;  %844 = vmatpush.bf16.msrb.mxu1 %v1270_v42 }
 0x3c4   :  { %v724_v10 = vmul.f32 %v716_v47, %v660_v8  ;;  %966 = vmatpush.bf16.msra.mxu2 %v1283_v1 }
 0x3c5   :  { %739 = vmatpush.bf16.msra.mxu0 %v734_v44  ;;  %v732_v52 = vpack.c.bf16 %v726_v41, %v725_v48  ;;  %v723_v55 = vmul.f32 %v715_v49, %v659_v53 }
 0x3c7   :  { %v731_v57 = vpack.c.bf16 %v724_v10, %v723_v55 }
 0x3c8   :  { %967 = vmatpush.bf16.msra.mxu2 %v1282_v2 }
 0x3c9   :  { %740 = vmatpush.bf16.msra.mxu0 %v733_v46 }
 0x3cc   :  { %968 = vmatpush.bf16.msra.mxu2 %v1281_v5 }
 0x3cd   :  { %741 = vmatpush.bf16.msra.mxu0 %v732_v52 }
 0x3d0   :  { %969 = vmatpush.bf16.msra.mxu2 %v1280_v6 }
 0x3d1   :  { %742 = vmatpush.bf16.msra.mxu0 %v731_v57 }
 0x3d4   :  { %1174 = vmatmul.msk.bf16.vlgmr.msra.gmra.mxu0 %vm333_vm2, %v1683_v26  ;;  %970 = vmatpush.bf16.msra.mxu2 %v1279_v32 }
 0x3d8   :  { %971 = vmatpush.bf16.msra.mxu2 %v1278_v19 }
 0x3e4   :  { %1175 = vmatmul.msk.bf16.gmra.mxu0 %vm333_vm2, %v1690_v50  ;;  %v759_v50 = vmul.f32 %v756_v60, %v1707_v13 }
 0x451   :  { %v744_v59 = vpop.f32.mrf.mxu0 }
 0x452   :  { %v761_v26 = vadd.f32 %v757_v54, %v744_v59 }
 0x459   :  { %v746_v63 = vpop.f32.mrf.mxu0 }
 0x45a   :  { %v762_v0 = vadd.f32 %v758_v62, %v746_v63 }
 0x45c   :  { %v765_v3 = vpack.c.bf16 %v762_v0, %v761_v26 }
 0x45e   :  { %845 = vmatmul.bf16.vlgmr.msrb.gmra.mxu1 %v765_v3 }
 0x461   :  { %v749_v4 = vpop.f32.mrf.mxu0 }
 0x462   :  { %v763_v9 = vadd.f32 %v759_v50, %v749_v4 }
 0x469   :  { %v751_v43 = vpop.f32.mrf.mxu0 }
 0x46a   :  { %v764_v61 = vadd.f32 %v760_v7, %v751_v43  ;;  %v1306_v7 = vld [vmem:[%s1809_s10 + $0x1] ss:$0 sm:$0xff]  ;;  %s1468_s10 = smov [#allocation9]  }
 0x46b   :  { %s1035_s24 = sshll.u32 %s1468_s10, 4  ;;  %s1036_s24 = int_to_ptr.vmem [resolvable:$true] %s1035_s24 }
 0x46c   :  { %v766_v11 = vpack.c.bf16 %v764_v61, %v763_v9 }
 0x46e   :  { %850 = vmatmul.bf16.gmra.mxu1 %v766_v11 }
 0x4db   :  { %v846_v12 = vpop.f32.mrf.mxu1 }
 0x4dc   :  { %v847_v22 = vadd.f32 %v1305_v20, %v846_v12 }
 0x4de   :  { %v860_v14 = vmul.f32 0.044715, %v847_v22  ;;  %v856_v52 = vmul.f32 0.5, %v847_v22 }
 0x4e0   :  { %v864_v29 = vmul.f32 %v860_v14, %v847_v22 }
 0x4e2   :  { %v868_v27 = vmul.f32 %v864_v29, %v847_v22 }
 0x4e3   :  { %v848_v25 = vpop.f32.mrf.mxu1 }
 0x4e4   :  { %v872_v34 = vadd.f32 %v868_v27, %v847_v22  ;;  %v849_v44 = vadd.f32 %v1305_v20, %v848_v25 }
 0x4e6   :  { %v861_v28 = vmul.f32 0.044715, %v849_v44  ;;  %v876_v33 = vmul.f32 0.7978846, %v872_v34  ;;  %v857_v53 = vmul.f32 0.5, %v849_v44 }
 0x4e8   :  { %v865_v35 = vmul.f32 %v861_v28, %v849_v44  ;;  %1355 = vtanh.f32 %v876_v33 }
 0x4ea   :  { %v869_v31 = vmul.f32 %v865_v35, %v849_v44 }
 0x4eb   :  { %v851_v38 = vpop.f32.mrf.mxu1 }
 0x4ec   :  { %v873_v23 = vadd.f32 %v869_v31, %v849_v44  ;;  %v852_v37 = vadd.f32 %v1305_v20, %v851_v38 }
 0x4ee   :  { %v877_v39 = vmul.f32 0.7978846, %v873_v23  ;;  %v862_v40 = vmul.f32 0.044715, %v852_v37  ;;  %v1356_v46 = vpop.eup %1355  ;;  %v858_v63 = vmul.f32 0.5, %v852_v37 }
 0x4ef   :  { %v884_v8 = vadd.f32 1.0, %v1356_v46 }
 0x4f0   :  { %1357 = vtanh.f32 %v877_v39  ;;  %v866_v45 = vmul.f32 %v862_v40, %v852_v37 }
 0x4f1   :  { %v888_v57 = vmul.f32 %v884_v8, %v856_v52 }
 0x4f2   :  { %v870_v21 = vmul.f32 %v866_v45, %v852_v37 }
 0x4f3   :  { %v853_v41 = vpop.f32.mrf.mxu1 }
 0x4f4   :  { %v854_v47 = vadd.f32 %v1305_v20, %v853_v41  ;;  %v874_v48 = vadd.f32 %v870_v21, %v852_v37 }
 0x4f6   :  { %v1358_v49 = vpop.eup %1357  ;;  %v863_v51 = vmul.f32 0.044715, %v854_v47  ;;  %v878_v56 = vmul.f32 0.7978846, %v874_v48  ;;  %v859_v26 = vmul.f32 0.5, %v854_v47 }
 0x4f7   :  { %v885_v10 = vadd.f32 1.0, %v1358_v49 }
 0x4f8   :  { %v867_v55 = vmul.f32 %v863_v51, %v854_v47  ;;  %1359 = vtanh.f32 %v878_v56 }
 0x4f9   :  { %v889_v36 = vmul.f32 %v885_v10, %v857_v53 }
 0x4fa   :  { %v871_v24 = vmul.f32 %v867_v55, %v854_v47 }
 0x4fb   :  { %v892_v58 = vpack.c.bf16 %v889_v36, %v888_v57 }
 0x4fc   :  { %v875_v42 = vadd.f32 %v871_v24, %v854_v47 }
 0x4fd   :  { %972 = vmatmul.bf16.vlgmr.msra.gmra.mxu2 %v892_v58 }
 0x4fe   :  { %v879_v59 = vmul.f32 0.7978846, %v875_v42  ;;  %v1360_v60 = vpop.eup %1359 }
 0x4ff   :  { %v886_v54 = vadd.f32 1.0, %v1360_v60 }
 0x500   :  { %1361 = vtanh.f32 %v879_v59 }
 0x501   :  { %v890_v3 = vmul.f32 %v886_v54, %v858_v63 }
 0x506   :  { %v1362_v62 = vpop.eup %1361 }
 0x507   :  { %v887_v0 = vadd.f32 1.0, %v1362_v62 }
 0x509   :  { %v891_v4 = vmul.f32 %v887_v0, %v859_v26 }
 0x50b   :  { %v893_v50 = vpack.c.bf16 %v891_v4, %v890_v3 }
 0x50d   :  { %977 = vmatmul.bf16.gmra.mxu2 %v893_v50 }
 0x580   :  { %v973_v43 = vpop.f32.mrf.mxu2 }
 0x581   :  { %v974_v9 = vadd.f32 %v1306_v7, %v973_v43 }
 0x583   :  { %v987_v61 = vmul.f32 0.044715, %v974_v9  ;;  %v983_v25 = vmul.f32 0.5, %v974_v9 }
 0x585   :  { %v991_v11 = vmul.f32 %v987_v61, %v974_v9 }
 0x587   :  { %v995_v15 = vmul.f32 %v991_v11, %v974_v9 }
 0x588   :  { %v975_v17 = vpop.f32.mrf.mxu2 }
 0x589   :  { %v999_v1 = vadd.f32 %v995_v15, %v974_v9  ;;  %v976_v2 = vadd.f32 %v1306_v7, %v975_v17 }
 0x58b   :  { %v1003_v5 = vmul.f32 0.7978846, %v999_v1  ;;  %v988_v6 = vmul.f32 0.044715, %v976_v2  ;;  %v984_v46 = vmul.f32 0.5, %v976_v2 }
 0x58d   :  { %1363 = vtanh.f32 %v1003_v5  ;;  %v992_v32 = vmul.f32 %v988_v6, %v976_v2 }
 0x58f   :  { %v996_v19 = vmul.f32 %v992_v32, %v976_v2 }
 0x590   :  { %v978_v20 = vpop.f32.mrf.mxu2 }
 0x591   :  { %v1000_v12 = vadd.f32 %v996_v19, %v976_v2  ;;  %v979_v22 = vadd.f32 %v1306_v7, %v978_v20 }
 0x593   :  { %v1364_v14 = vpop.eup %1363  ;;  %v1004_v29 = vmul.f32 0.7978846, %v1000_v12  ;;  %v989_v27 = vmul.f32 0.044715, %v979_v22 }
 0x594   :  { %v1011_v34 = vadd.f32 1.0, %v1364_v14 }
 0x595   :  { %1365 = vtanh.f32 %v1004_v29  ;;  %v993_v44 = vmul.f32 %v989_v27, %v979_v22 }
 0x596   :  { %v1015_v28 = vmul.f32 %v1011_v34, %v983_v25 }
 0x597   :  { %v997_v33 = vmul.f32 %v993_v44, %v979_v22 }
 0x598   :  { %v980_v35 = vpop.f32.mrf.mxu2  ;;  %v1019_v31 = vadd.f32 %v1015_v28, %v1716_v16  ;;  %v985_v16 = vmul.f32 0.5, %v979_v22 }
 0x599   :  { %v1001_v38 = vadd.f32 %v997_v33, %v979_v22  ;;  %v981_v23 = vadd.f32 %v1306_v7, %v980_v35 }
 0x59a   :  { %v1023_v37 = vmul.f32 0.70710677, %v1019_v31 }
 0x59b   :  { %v1366_v39 = vpop.eup %1365  ;;  %v1005_v40 = vmul.f32 0.7978846, %v1001_v38  ;;  %v990_v45 = vmul.f32 0.044715, %v981_v23  ;;  %v986_v24 = vmul.f32 0.5, %v981_v23 }
 0x59c   :  { %v1012_v21 = vadd.f32 1.0, %v1366_v39  ;;  %1027 = vst [vmem:[#allocation9] sm:$0xff] %v1023_v37 }
 0x59d   :  { %1367 = vtanh.f32 %v1005_v40  ;;  %v994_v41 = vmul.f32 %v990_v45, %v981_v23 }
 0x59e   :  { %v1016_v47 = vmul.f32 %v1012_v21, %v984_v46 }
 0x59f   :  { %v998_v48 = vmul.f32 %v994_v41, %v981_v23 }
 0x5a0   :  { %v1020_v8 = vadd.f32 %v1016_v47, %v1714_v18 }
 0x5a1   :  { %v1002_v49 = vadd.f32 %v998_v48, %v981_v23 }
 0x5a2   :  { %v1024_v51 = vmul.f32 0.70710677, %v1020_v8 }
 0x5a3   :  { %v1368_v52 = vpop.eup %1367  ;;  %v1006_v53 = vmul.f32 0.7978846, %v1002_v49 }
 0x5a4   :  { %v1013_v10 = vadd.f32 1.0, %v1368_v52  ;;  %1028 = vst [vmem:[#allocation9 + $0x8] sm:$0xff] %v1024_v51 }
 0x5a5   :  { %1369 = vtanh.f32 %v1006_v53 }
 0x5a6   :  { %v1017_v55 = vmul.f32 %v1013_v10, %v985_v16 }
 0x5a8   :  { %v1021_v56 = vadd.f32 %v1017_v55, %v1707_v13 }
 0x5aa   :  { %v1025_v57 = vmul.f32 0.70710677, %v1021_v56 }
 0x5ab   :  { %v1370_v36 = vpop.eup %1369 }
 0x5ac   :  { %v1014_v58 = vadd.f32 1.0, %v1370_v36  ;;  %1029 = vst [vmem:[#allocation9 + $0x10] sm:$0xff] %v1025_v57 }
 0x5ae   :  { %v1018_v42 = vmul.f32 %v1014_v58, %v986_v24 }
 0x5b0   :  { %v1022_v18 = vadd.f32 %v1018_v42, %v1709_v30 }
 0x5b2   :  { %v1026_v59 = vmul.f32 0.70710677, %v1022_v18 }
 0x5b4   :  { %1030 = vst [vmem:[#allocation9 + $0x18] sm:$0xff] %v1026_v59 }
 0x5b5   :  { %1043 = dma.vmem_to_hbm [thread:$0]  %s1036_s24, 512, %s1038_s27, [#allocation4], %s1469_s28, %s1469_s28, %s1470_s29  }
 0x5b6   :  { %1461 = dma.done.wait [#allocation4], 512  }
 0x5b7   :  { %1462 = vsyncadd [#allocation4], 4294966784 }
 0x5b8   :  { %1048 = vsyncpa [#allocation3], 1 }
 0x5b9   :  { %1049 = vsyncpa [#allocation8], 1 }
 0x5ba   :  { %1050 = vsyncpa [#allocation4], 1 }
 0x5bb   :  { %1051 = vsyncpa [#allocation5], 1 }

</bundles_post_ra>
